<compile_context>
chip_gen: v5e
topology: v5e:2x2
jax: 0.10.0
libtpu: 0.0.40
codegen_flags: <defaults>
</compile_context>

<pallas_src>
import functools
import math

import jax
import jax.numpy as jnp
from jax import lax
from jax.experimental import pallas as pl
from jax.experimental.pallas import tpu as pltpu


def _round_up(x: int, m: int) -> int:
    return ((x + m - 1) // m) * m


# ---------------------------------------------------------------------------
# Kernel bodies
# ---------------------------------------------------------------------------

def _onehot_gather_kernel(ids_ref, tab_ref, out_ref, *, vocab_size, scale):
    """Small-vocab path: gather = one-hot(TN, V) @ table(V, E) on the MXU.

    ids_ref: (TN, 1) int32 token ids for this tile (VMEM).
    tab_ref: (V, E)  embedding table, resident in VMEM across the grid.
    out_ref: (TN, E) output tile.
    """
    ids = ids_ref[...]                                              # (TN, 1)
    vid = lax.broadcasted_iota(jnp.int32, (1, vocab_size), 1)       # (1, V)
    onehot = (ids == vid).astype(tab_ref.dtype)                     # (TN, V)
    rows = jnp.dot(onehot, tab_ref[...],
                   preferred_element_type=jnp.float32)              # (TN, E)
    out_ref[...] = (rows * scale).astype(out_ref.dtype)


def _row_gather_kernel(ids_smem, tab_ref, out_ref, *, tile_tokens, scale):
    """General path: per-row dynamic-slice gather from a VMEM-resident table.

    ids_smem: (n_pad,) int32 token ids in SMEM (scalar prefetch).
    tab_ref:  (V, E) embedding table, resident in VMEM across the grid.
    out_ref:  (TN, E) output tile.
    """
    base = pl.program_id(0) * tile_tokens

    def body(r, carry):
        row_id = ids_smem[base + r]
        row = tab_ref[pl.ds(row_id, 1), :]                          # (1, E)
        out_ref[pl.ds(r, 1), :] = row * scale
        return carry

    lax.fori_loop(0, tile_tokens, body, 0, unroll=False)


# ---------------------------------------------------------------------------
# Wrapper
# ---------------------------------------------------------------------------

def token_embedding(tokens: jax.Array, emb_table: jax.Array,
                    *, tile_tokens: int = 256,
                    onehot_vocab_max: int = 512) -> jax.Array:
    """Pallas equivalent of TokenEmbedding.forward.

    tokens:    integer array, any shape (e.g. (B, S)).
    emb_table: (vocab_size, emb_size) float embedding weights.
    returns:   array of shape tokens.shape + (emb_size,), dtype of emb_table.
    """
    vocab_size, emb_size = emb_table.shape
    scale = math.sqrt(float(emb_size))

    # .long() equivalent (indices); clamp so no OOB row is ever addressed.
    ids = tokens.reshape(-1).astype(jnp.int32)
    ids = jnp.clip(ids, 0, vocab_size - 1)

    n_tok = ids.shape[0]
    tn = min(tile_tokens, _round_up(n_tok, 8))        # sublane-dense tile
    n_pad = _round_up(n_tok, tn)
    if n_pad != n_tok:
        ids = jnp.pad(ids, (0, n_pad - n_tok))        # pad with id 0 (valid row)
    n_tiles = n_pad // tn

    if vocab_size <= onehot_vocab_max:
        # --- small vocab: resident table + one-hot MXU matmul ---
        kernel = functools.partial(
            _onehot_gather_kernel, vocab_size=vocab_size, scale=scale)
        out_flat = pl.pallas_call(
            kernel,
            out_shape=jax.ShapeDtypeStruct((n_pad, emb_size), emb_table.dtype),
            grid_spec=pltpu.PrefetchScalarGridSpec(
                num_scalar_prefetch=0,
                grid=(n_tiles,),
                in_specs=[
                    # (TN, 1) ids tile per grid step.
                    pl.BlockSpec((tn, 1), lambda t: (t, 0)),
                    # Full table, constant block index => resident in VMEM.
                    pl.BlockSpec((vocab_size, emb_size), lambda t: (0, 0)),
                ],
                out_specs=pl.BlockSpec((tn, emb_size), lambda t: (t, 0)),
            ),
            compiler_params=pltpu.CompilerParams(
                dimension_semantics=("parallel",),
            ),
        )(ids.reshape(n_pad, 1), emb_table)
    else:
        # --- larger vocab: resident table + in-kernel row gather ---
        # TODO(synk): for tables too large for VMEM (e.g. 32K x 4K f32 on
        # v7x's 64 MiB), switch to an HBM table + manual double-buffered
        # per-tile DMA gather (P4) instead of keeping the table resident.
        table_bytes = vocab_size * emb_size * emb_table.dtype.itemsize
        vmem_limit = min(64 * 2**20,
                         table_bytes + 8 * tn * emb_size * 4 + (1 << 20))
        kernel = functools.partial(
            _row_gather_kernel, tile_tokens=tn, scale=scale)
        out_flat = pl.pallas_call(
            kernel,
            out_shape=jax.ShapeDtypeStruct((n_pad, emb_size), emb_table.dtype),
            grid_spec=pltpu.PrefetchScalarGridSpec(
                num_scalar_prefetch=1,                 # ids -> SMEM
                grid=(n_tiles,),
                in_specs=[
                    pl.BlockSpec((vocab_size, emb_size),
                                 lambda t, ids_ref: (0, 0)),
                ],
                out_specs=pl.BlockSpec((tn, emb_size),
                                       lambda t, ids_ref: (t, 0)),
            ),
            compiler_params=pltpu.CompilerParams(
                dimension_semantics=("parallel",),
                vmem_limit_bytes=vmem_limit,
            ),
        )(ids, emb_table)

    return out_flat[:n_tok].reshape(tokens.shape + (emb_size,))


def token_embedding_ref(tokens: jax.Array, emb_table: jax.Array) -> jax.Array:
    """Pure-JAX reference for correctness checking."""
    emb_size = emb_table.shape[1]
    return jnp.take(emb_table, tokens.astype(jnp.int32), axis=0) * math.sqrt(
        float(emb_size)
    )


if __name__ == "__main__":
    # Small, deterministic setup consistent with the module's __init__.
    vocab_size = 64
    emb_size = 128          # lane-dense last dim
    batch, seq = 2, 8

    key = jax.random.PRNGKey(0)
    k_w, k_t = jax.random.split(key)

    # Deterministic "nn.Embedding" weight init (N(0,1), like PyTorch default).
    emb_table = jax.random.normal(k_w, (vocab_size, emb_size), dtype=jnp.float32)
    tokens = jax.random.randint(k_t, (batch, seq), 0, vocab_size, dtype=jnp.int32)

    out = token_embedding(tokens, emb_table)
    out = jax.block_until_ready(out)

    expected = token_embedding_ref(tokens, emb_table)
    assert out.shape == (batch, seq, emb_size), out.shape
    assert out.dtype == jnp.float32, out.dtype
    assert jnp.allclose(out, expected, atol=1e-5, rtol=1e-5), "mismatch vs reference"

    print("KERNEL_OK")
</pallas_src>

<mosaic_0001>
module attributes {stable_mosaic.version = 11 : i64} {
  func.func @_onehot_gather_kernel(%arg0: i32, %arg1: memref<16x1xi32, #tpu.memory_space<vmem>>, %arg2: memref<64x128xf32, #tpu.memory_space<vmem>>, %arg3: memref<16x128xf32, #tpu.memory_space<vmem>>) attributes {dimension_semantics = [#tpu.dimension_semantics<parallel>], iteration_bounds = array<i64: 1>, scalar_prefetch = 0 : i64, scratch_operands = 0 : i64, tpu.core_type = #tpu.core_type<tc>, window_params = [{transform_indices = @transform_0, window_bounds = array<i64: 16, 1>}, {pipeline_mode = #tpu.pipeline_mode<synchronous>, transform_indices = @transform_1, window_bounds = array<i64: 64, 128>}, {transform_indices = @transform_2, window_bounds = array<i64: 16, 128>}]} {
    %c0 = arith.constant 0 : index
    %c0_0 = arith.constant 0 : index
    %0 = vector.load %arg1[%c0, %c0_0] : memref<16x1xi32, #tpu.memory_space<vmem>>, vector<16x1xi32>
    %1 = tpu.iota {dimensions = array<i32: 1>} : vector<1x64xi32>
    %2 = vector.broadcast %0 : vector<16x1xi32> to vector<16x64xi32>
    %3 = vector.broadcast %1 : vector<1x64xi32> to vector<16x64xi32>
    %4 = arith.cmpi eq, %2, %3 : vector<16x64xi32>
    %5 = arith.extui %4 : vector<16x64xi1> to vector<16x64xi32>
    %6 = arith.sitofp %5 : vector<16x64xi32> to vector<16x64xf32>
    %c0_1 = arith.constant 0 : index
    %c0_2 = arith.constant 0 : index
    %7 = vector.load %arg2[%c0_1, %c0_2] : memref<64x128xf32, #tpu.memory_space<vmem>>, vector<64x128xf32>
    %cst = arith.constant dense<0.000000e+00> : vector<16x128xf32>
    %8 = tpu.matmul %6, %7, %cst {dimension_numbers = #tpu.dot_dimension_numbers<[1], [0], [0], [1], [0, 0, 1, 1], [], []>} : vector<16x64xf32>, vector<64x128xf32>, vector<16x128xf32> -> vector<16x128xf32>
    %cst_3 = arith.constant 11.3137083 : f32
    %9 = vector.broadcast %cst_3 : f32 to vector<16x128xf32>
    %10 = arith.mulf %8, %9 : vector<16x128xf32>
    %c0_4 = arith.constant 0 : index
    %c0_5 = arith.constant 0 : index
    %11 = vector.load %arg3[%c0_4, %c0_5] : memref<16x128xf32, #tpu.memory_space<vmem>>, vector<16x128xf32>
    tpu.vector_store %arg3[%c0_4, %c0_5], %10 {strides = array<i32>} : memref<16x128xf32, #tpu.memory_space<vmem>>, vector<16x128xf32>,
    return
  }
  func.func @transform_0(%arg0: i32) -> (i32, i32) {
    %c0_i32 = arith.constant 0 : i32
    %c0_i32_0 = arith.constant 0 : i32
    return %arg0, %c0_i32 : i32, i32
  }
  func.func @transform_1(%arg0: i32) -> (i32, i32) {
    %c0_i32 = arith.constant 0 : i32
    %c0_i32_0 = arith.constant 0 : i32
    %c0_i32_1 = arith.constant 0 : i32
    return %c0_i32, %c0_i32_0 : i32, i32
  }
  func.func @transform_2(%arg0: i32) -> (i32, i32) {
    %c0_i32 = arith.constant 0 : i32
    %c0_i32_0 = arith.constant 0 : i32
    return %arg0, %c0_i32 : i32, i32
  }
}

</mosaic_0001>

<bundles_post_ra>
// kernel: tpu_custom_call.1
= control target key start
LH: loop header
LB: loop body
LE: loop exit
PB: predicated region body
PF: predicated region fallthrough
CT: control target
= control target key end

     0   :  { %7 = vsyncpa [#allocation3], 0  ;;  %s215_s0 = inlined_call_operand.vmem [shape: s32[16,1], index: 0, kind: input, shape index: {}]   ;;  %s216_s1 = inlined_call_operand.hbm [shape: f32[64,128], index: 1, kind: input, shape index: {}]   ;;  %s217_s2 = inlined_call_operand.hbm [shape: f32[16,128], index: 2, kind: output, shape index: {}]  }
   0x1   :  { %8 = vsyncpa [#allocation4], 0  ;;  %s15_s11 = sshll.u32 %s216_s1, 4  ;;  %s176_s12 = smov [#allocation2]   ;;  %s16_s11 = int_to_ptr.hbm [resolvable:$true] %s15_s11 }
   0x2   :  { %s17_s13 = sshll.u32 %s176_s12, 4  ;;  %s177_s14 = smov 128   ;;  %s18_s13 = int_to_ptr.vmem [resolvable:$true] %s17_s13 }
   0x3   :  { %s178_s15 = smov 8  }
   0x4   :  { %23 = dma.hbm_to_vmem [thread:$0]  %s16_s11, 1024, %s18_s13, [#allocation3], %s177_s14, %s177_s14, %s178_s15  }
   0x5   :  { %172 = dma.done.wait [#allocation3], 1024  }
   0x6   :  { %173 = vsyncadd [#allocation3], 4294966272  ;;  %v179_v0 = vmov 0   ;;  %v28_v1 = vld [vmem:[%s215_s0] sm:$0xff]  ;;  %v51_v2 = vld [vmem:[#allocation2 + $0x38] sm:$0xff]  ;;  %v30_v11 = vlaneseq  ;;  %vm52_vm0 = vcmask 523264  }
   0x7   :  { %123 = vset.pattern.permute.xlu0 %v179_v0  ;;  %67 = vmatpush.msra.mxu0 %v51_v2  ;;  %v50_v3 = vld [vmem:[#allocation2 + $0x30] sm:$0xff]  ;;  %v49_v4 = vld [vmem:[#allocation2 + $0x28] sm:$0xff]  ;;  %v48_v5 = vld [vmem:[#allocation2 + $0x20] sm:$0xff]  ;;  %v180_v14 = vmov 0.0   ;;  %s92_s22 = sshll.u32 %s217_s2, 4  ;;  %s93_s22 = int_to_ptr.hbm [resolvable:$true] %s92_s22 }
   0x8   :  { %33 = vperm.xlu0 %123, %v28_v1   ;;  %109 = vmatpush.msra.mxu1 %v51_v2  ;;  %v29_v6 = vld [vmem:[%s215_s0 + $0x8] sm:$0xff]  ;;  %v47_v7 = vld [vmem:[#allocation2 + $0x18] sm:$0xff]  ;;  %v46_v8 = vld [vmem:[#allocation2 + $0x10] sm:$0xff]  ;;  %v31_v12 = vand.u32 127, %v30_v11  ;;  %s181_s0 = smov [#allocation5]  }
   0x9   :  { %68 = vmatpush.msra.mxu0 %v50_v3  ;;  %v45_v9 = vld [vmem:[#allocation2 + $0x8] sm:$0xff]  ;;  %v44_v10 = vld [vmem:[#allocation2] sm:$0xff]  ;;  %s90_s19 = sshll.u32 %s181_s0, 4  ;;  %s91_s19 = int_to_ptr.vmem [resolvable:$true] %s90_s19 }
   0xa   :  { %110 = vmatpush.msra.mxu1 %v50_v3 }
   0xb   :  { %69 = vmatpush.msra.mxu0 %v49_v4 }
   0xc   :  { %111 = vmatpush.msra.mxu1 %v49_v4 }
   0xd   :  { %70 = vmatpush.msra.mxu0 %v48_v5 }
   0xe   :  { %112 = vmatpush.msra.mxu1 %v48_v5 }
   0xf   :  { %71 = vmatpush.msra.mxu0 %v47_v7 }
  0x10   :  { %36 = vperm.xlu0 %123, %v29_v6   ;;  %113 = vmatpush.msra.mxu1 %v47_v7 }
  0x11   :  { %72 = vmatpush.msra.mxu0 %v46_v8 }
  0x12   :  { %114 = vmatpush.msra.mxu1 %v46_v8 }
  0x13   :  { %73 = vmatpush.msra.mxu0 %v45_v9 }
  0x14   :  { %115 = vmatpush.msra.mxu1 %v45_v9 }
  0x15   :  { %74 = vmatpush.msra.mxu0 %v44_v10 }
  0x16   :  { %116 = vmatpush.msra.mxu1 %v44_v10 }
  0x7a   :  { %v34_v13 = vpop.permute.xlu0 %33 }
  0x7b   :  { %vm38_vm1 = vcmp.eq.s32.totalorder %v34_v13, %v31_v12 }
  0x7c   :  { %v105_v15 = vsel %vm38_vm1, 1.0, %v180_v14 }
  0x7d   :  { %107 = vmatmul.msk.f32.vlgmr.msra.gmra.mxu0 %vm52_vm0, %v105_v15 }
  0x82   :  { %v37_v16 = vpop.permute.xlu0 %36 }
  0x83   :  { %vm39_vm2 = vcmp.eq.s32.totalorder %v37_v16, %v31_v12 }
  0x84   :  { %v106_v17 = vsel %vm39_vm2, 1.0, %v180_v14 }
  0x85   :  { %108 = vmatmul.msk.f32.vlgmr.msra.gmra.mxu1 %vm52_vm0, %v106_v17 }
  0xfa   :  { %v76_v18 = vpop.f32.mrf.mxu0 }
  0xfb   :  { %v82_v19 = vmul.f32 11.313708, %v76_v18 }
  0xfd   :  { %84 = vst [vmem:[#allocation5] sm:$0xff] %v82_v19 }
 0x102   :  { %v79_v20 = vpop.f32.mrf.mxu1 }
 0x103   :  { %v83_v21 = vmul.f32 11.313708, %v79_v20 }
 0x105   :  { %85 = vst [vmem:[#allocation5 + $0x8] sm:$0xff] %v83_v21 }
 0x106   :  { %98 = dma.vmem_to_hbm [thread:$0]  %s91_s19, 256, %s93_s22, [#allocation4], %s177_s14, %s177_s14, %s178_s15  }
 0x107   :  { %174 = dma.done.wait [#allocation4], 256  }
 0x108   :  { %175 = vsyncadd [#allocation4], 4294967040 }
 0x109   :  { %103 = vsyncpa [#allocation3], 1 }
 0x10a   :  { %104 = vsyncpa [#allocation4], 1 }

</bundles_post_ra>
